<compile_context>
chip_gen: v6e
topology: v6e:2x2x1
jax: 0.10.0
libtpu: 0.0.40
codegen_flags: <defaults>
</compile_context>

<pallas_src>
import functools

import jax
import jax.numpy as jnp
from jax.experimental import pallas as pl
from jax.experimental.pallas import tpu as pltpu

# ----------------------------------------------------------------------------
# Model configuration (mirrors SimplePerceptron(act_functions, num_nodes,
# num_layers)).  Activation functions are chosen deterministically in-script:
#   act_functions = [tanh, relu, tanh, tanh, ...]
# i.e. tanh after Linear(1,2), relu after Linear(2,N) and after the final
# Linear(N,2), tanh after every inner Linear(N,N).
# ----------------------------------------------------------------------------
NUM_NODES = 32
NUM_LAYERS = 4          # -> num_layers - 2 = 2 inner Linear(N, N) layers
B_TILE_MAX = 1024       # batch rows per grid step once batch gets large


def _build_act_functions(num_layers):
    acts = [jnp.tanh, jax.nn.relu]
    acts += [jnp.tanh] * (num_layers - 2)
    return acts


def _layer_dims(num_nodes, num_layers):
    """(in, out) for each nn.Linear, and the activation applied after it."""
    acts = _build_act_functions(num_layers)
    dims = [(1, 2), (2, num_nodes)]
    layer_acts = [acts[0], acts[1]]
    for i in range(num_layers - 2):
        dims.append((num_nodes, num_nodes))
        layer_acts.append(acts[i + 2])
    dims.append((num_nodes, 2))
    layer_acts.append(acts[1])
    return dims, layer_acts


# ----------------------------------------------------------------------------
# Pallas kernel: full forward pass for one batch tile (all weights resident).
# ----------------------------------------------------------------------------
def _mlp_kernel(x_ref, w0_ref, b0_ref, w1_ref, b1_ref,
                wi_ref, bi_ref, wl_ref, bl_ref, o_ref, *, layer_acts):
    num_inner = len(layer_acts) - 3
    bt = x_ref.shape[0]
    n = w1_ref.shape[1]

    # Broadcast x across lanes ONCE (single XLU broadcast); layers 0-1 are
    # then pure lane-aligned VPU FMAs + one EUP push per layer-0 output.
    xb = jnp.broadcast_to(x_ref[...], (bt, n))                     # (BT, N)

    # Layer 0: Linear(1, 2) + act0 (w0/b0 pre-broadcast to (2, N) rows).
    h0a = layer_acts[0](xb * w0_ref[0:1, :] + b0_ref[0:1, :])      # (BT, N)
    h0b = layer_acts[0](xb * w0_ref[1:2, :] + b0_ref[1:2, :])      # (BT, N)

    # Layer 1: Linear(2, N) + act1 -- K=2 contraction as two rank-1 VPU FMAs.
    h = h0a * w1_ref[0:1, :] + h0b * w1_ref[1:2, :] + b1_ref[...]  # (BT, N)
    h = layer_acts[1](h)

    # Inner Linear(N, N) layers on the MXU with f32 accumulation (static
    # unroll; N=32 uses a small corner of the MXU, which is fine -- the
    # kernel is dispatch/DMA bound, not MXU bound).
    for l in range(num_inner):
        h = jnp.dot(h, wi_ref[l], preferred_element_type=jnp.float32)
        h = layer_acts[2 + l](h + bi_ref[l])

    # Final Linear(N, 2) + act; narrow (BT, 2) store (masked vst).
    out = jnp.dot(h, wl_ref[...], preferred_element_type=jnp.float32)
    o_ref[...] = layer_acts[-1](out + bl_ref[...])


# ----------------------------------------------------------------------------
# One-time parameter packing (hoisted out of the per-call path).
# ----------------------------------------------------------------------------
def prepare_params(weights, biases):
    """weights[l]: (in_l, out_l) f32 (x @ W layout); biases[l]: (out_l,)."""
    num_l = len(weights)
    assert num_l >= 4, "kernel expects num_layers >= 3 (>=1 inner Linear(N,N))"
    n = weights[1].shape[1]
    num_inner = num_l - 3

    w0 = jnp.asarray(weights[0], jnp.float32).reshape(2)
    b0 = jnp.asarray(biases[0], jnp.float32).reshape(2)
    # Pre-broadcast layer-0's 2+2 params into lane-aligned (2, N) rows so the
    # kernel needs no SMEM scalars and no per-term lane broadcasts.
    w0_rows = jnp.tile(w0[:, None], (1, n))                         # (2, N)
    b0_rows = jnp.tile(b0[:, None], (1, n))                         # (2, N)
    w1 = jnp.asarray(weights[1], jnp.float32)                       # (2, N)
    b1 = jnp.asarray(biases[1], jnp.float32).reshape(1, n)          # (1, N)
    wi = jnp.stack([jnp.asarray(weights[2 + l], jnp.float32)
                    for l in range(num_inner)])                     # (ni, N, N)
    bi = jnp.stack([jnp.asarray(biases[2 + l], jnp.float32).reshape(1, n)
                    for l in range(num_inner)])                     # (ni, 1, N)
    wl = jnp.asarray(weights[-1], jnp.float32)                      # (N, 2)
    bl = jnp.asarray(biases[-1], jnp.float32).reshape(1, 2)         # (1, 2)
    return (w0_rows, b0_rows, w1, b1, wi, bi, wl, bl)


def make_forward(layer_acts):
    kernel = functools.partial(_mlp_kernel, layer_acts=tuple(layer_acts))

    # NOTE: batch appears in x.shape, so jax.jit compiles once per distinct
    # batch size -- bucket batch sizes at the call site to bound recompiles.
    @jax.jit
    def forward(x, packed):
        (w0, b0, w1, b1, wi, bi, wl, bl) = packed
        batch = x.shape[0]
        # Small batches: one full-extent block (exempt from the (8,128) rule,
        # Mosaic pads the vregs).  Large batches: tile the batch so input DMA
        # and output writeback double-buffer against compute, and the grid is
        # sharded across v7x's two TensorCores via "parallel" semantics.
        b_tile = batch if batch <= B_TILE_MAX else B_TILE_MAX
        grid = (pl.cdiv(batch, b_tile),)

        def resident(a):  # whole array, same block every grid step
            return pl.BlockSpec(a.shape, lambda i, _nd=a.ndim: (0,) * _nd)

        return pl.pallas_call(
            kernel,
            out_shape=jax.ShapeDtypeStruct((batch, 2), jnp.float32),
            grid=grid,
            in_specs=[pl.BlockSpec((b_tile, 1), lambda i: (i, 0)),   # x
                      resident(w0), resident(b0),                    # layer 0
                      resident(w1), resident(b1),                    # layer 1
                      resident(wi), resident(bi),                    # inner
                      resident(wl), resident(bl)],                   # final
            out_specs=pl.BlockSpec((b_tile, 2), lambda i: (i, 0)),
            compiler_params=pltpu.CompilerParams(
                dimension_semantics=("parallel",)),
        )(x.astype(jnp.float32), w0, b0, w1, b1, wi, bi, wl, bl)

    return forward


# ----------------------------------------------------------------------------
# Deterministic parameter init (PyTorch-style uniform(-1/sqrt(in), 1/sqrt(in)))
# ----------------------------------------------------------------------------
def init_params(key, num_nodes, num_layers):
    dims, layer_acts = _layer_dims(num_nodes, num_layers)
    weights, biases = [], []
    for (din, dout) in dims:
        key, kw, kb = jax.random.split(key, 3)
        bound = 1.0 / jnp.sqrt(jnp.float32(din))
        # stored as (in, out) so the kernel computes h @ W (== x @ W_torch.T)
        weights.append(jax.random.uniform(kw, (din, dout), jnp.float32,
                                          -bound, bound))
        biases.append(jax.random.uniform(kb, (dout,), jnp.float32,
                                         -bound, bound))
    return weights, biases, layer_acts


def reference_forward(x, weights, biases, layer_acts):
    h = x
    for w, b, act in zip(weights, biases, layer_acts):
        h = act(h @ w + b)
    return h


if __name__ == "__main__":
    key = jax.random.PRNGKey(0)
    key, kx = jax.random.split(key)

    batch = 2
    x = jax.random.normal(kx, (batch, 1), jnp.float32)   # input dim = 1

    weights, biases, layer_acts = init_params(key, NUM_NODES, NUM_LAYERS)
    packed = prepare_params(weights, biases)              # one-time packing
    forward = make_forward(layer_acts)

    out = jax.block_until_ready(forward(x, packed))

    ref = reference_forward(x, weights, biases, layer_acts)
    assert out.shape == (batch, 2)
    assert jnp.allclose(out, ref, atol=1e-5, rtol=1e-5)

    print("KERNEL_OK")
</pallas_src>

<mosaic_0001>
module attributes {stable_mosaic.version = 11 : i64} {
  func.func @_mlp_kernel(%arg0: i32, %arg1: memref<2x1xf32, #tpu.memory_space<vmem>>, %arg2: memref<2x32xf32, #tpu.memory_space<vmem>>, %arg3: memref<2x32xf32, #tpu.memory_space<vmem>>, %arg4: memref<2x32xf32, #tpu.memory_space<vmem>>, %arg5: memref<1x32xf32, #tpu.memory_space<vmem>>, %arg6: memref<2x32x32xf32, #tpu.memory_space<vmem>>, %arg7: memref<2x1x32xf32, #tpu.memory_space<vmem>>, %arg8: memref<32x2xf32, #tpu.memory_space<vmem>>, %arg9: memref<1x2xf32, #tpu.memory_space<vmem>>, %arg10: memref<2x2xf32, #tpu.memory_space<vmem>>) attributes {dimension_semantics = [#tpu.dimension_semantics<parallel>], iteration_bounds = array<i64: 1>, scalar_prefetch = 0 : i64, scratch_operands = 0 : i64, tpu.core_type = #tpu.core_type<tc>, window_params = [{transform_indices = @transform_0, window_bounds = array<i64: 2, 1>}, {pipeline_mode = #tpu.pipeline_mode<synchronous>, transform_indices = @transform_1, window_bounds = array<i64: 2, 32>}, {pipeline_mode = #tpu.pipeline_mode<synchronous>, transform_indices = @transform_2, window_bounds = array<i64: 2, 32>}, {pipeline_mode = #tpu.pipeline_mode<synchronous>, transform_indices = @transform_3, window_bounds = array<i64: 2, 32>}, {pipeline_mode = #tpu.pipeline_mode<synchronous>, transform_indices = @transform_4, window_bounds = array<i64: 1, 32>}, {pipeline_mode = #tpu.pipeline_mode<synchronous>, transform_indices = @transform_5, window_bounds = array<i64: 2, 32, 32>}, {pipeline_mode = #tpu.pipeline_mode<synchronous>, transform_indices = @transform_6, window_bounds = array<i64: 2, 1, 32>}, {pipeline_mode = #tpu.pipeline_mode<synchronous>, transform_indices = @transform_7, window_bounds = array<i64: 32, 2>}, {pipeline_mode = #tpu.pipeline_mode<synchronous>, transform_indices = @transform_8, window_bounds = array<i64: 1, 2>}, {transform_indices = @transform_9, window_bounds = array<i64: 2, 2>}]} {
    %c0 = arith.constant 0 : index
    %c0_0 = arith.constant 0 : index
    %0 = vector.load %arg1[%c0, %c0_0] : memref<2x1xf32, #tpu.memory_space<vmem>>, vector<2x1xf32>
    %1 = vector.shape_cast %0 : vector<2x1xf32> to vector<2x1xf32>
    %2 = vector.broadcast %1 : vector<2x1xf32> to vector<2x32xf32>
    %c0_1 = arith.constant 0 : index
    %c0_2 = arith.constant 0 : index
    %3 = vector.load %arg2[%c0_1, %c0_2] : memref<2x32xf32, #tpu.memory_space<vmem>>, vector<1x32xf32>
    %4 = vector.broadcast %3 : vector<1x32xf32> to vector<2x32xf32>
    %5 = arith.mulf %2, %4 : vector<2x32xf32>
    %c0_3 = arith.constant 0 : index
    %c0_4 = arith.constant 0 : index
    %6 = vector.load %arg3[%c0_3, %c0_4] : memref<2x32xf32, #tpu.memory_space<vmem>>, vector<1x32xf32>
    %7 = vector.broadcast %6 : vector<1x32xf32> to vector<2x32xf32>
    %8 = arith.addf %5, %7 : vector<2x32xf32>
    %9 = math.tanh %8 : vector<2x32xf32>
    %c1 = arith.constant 1 : index
    %c0_5 = arith.constant 0 : index
    %10 = vector.load %arg2[%c1, %c0_5] : memref<2x32xf32, #tpu.memory_space<vmem>>, vector<1x32xf32>
    %11 = vector.broadcast %10 : vector<1x32xf32> to vector<2x32xf32>
    %12 = arith.mulf %2, %11 : vector<2x32xf32>
    %c1_6 = arith.constant 1 : index
    %c0_7 = arith.constant 0 : index
    %13 = vector.load %arg3[%c1_6, %c0_7] : memref<2x32xf32, #tpu.memory_space<vmem>>, vector<1x32xf32>
    %14 = vector.broadcast %13 : vector<1x32xf32> to vector<2x32xf32>
    %15 = arith.addf %12, %14 : vector<2x32xf32>
    %16 = math.tanh %15 : vector<2x32xf32>
    %c0_8 = arith.constant 0 : index
    %c0_9 = arith.constant 0 : index
    %17 = vector.load %arg4[%c0_8, %c0_9] : memref<2x32xf32, #tpu.memory_space<vmem>>, vector<1x32xf32>
    %18 = vector.broadcast %17 : vector<1x32xf32> to vector<2x32xf32>
    %19 = arith.mulf %9, %18 : vector<2x32xf32>
    %c1_10 = arith.constant 1 : index
    %c0_11 = arith.constant 0 : index
    %20 = vector.load %arg4[%c1_10, %c0_11] : memref<2x32xf32, #tpu.memory_space<vmem>>, vector<1x32xf32>
    %21 = vector.broadcast %20 : vector<1x32xf32> to vector<2x32xf32>
    %22 = arith.mulf %16, %21 : vector<2x32xf32>
    %23 = arith.addf %19, %22 : vector<2x32xf32>
    %c0_12 = arith.constant 0 : index
    %c0_13 = arith.constant 0 : index
    %24 = vector.load %arg5[%c0_12, %c0_13] : memref<1x32xf32, #tpu.memory_space<vmem>>, vector<1x32xf32>
    %25 = vector.broadcast %24 : vector<1x32xf32> to vector<2x32xf32>
    %26 = arith.addf %23, %25 : vector<2x32xf32>
    %cst = arith.constant 0.000000e+00 : f32
    %27 = vector.broadcast %cst : f32 to vector<2x32xf32>
    %28 = arith.maximumf %26, %27 : vector<2x32xf32>
    %c0_14 = arith.constant 0 : index
    %c0_15 = arith.constant 0 : index
    %c0_16 = arith.constant 0 : index
    %29 = vector.load %arg6[%c0_14, %c0_15, %c0_16] : memref<2x32x32xf32, #tpu.memory_space<vmem>>, vector<1x32x32xf32>
    %30 = vector.shape_cast %29 : vector<1x32x32xf32> to vector<32x32xf32>
    %cst_17 = arith.constant dense<0.000000e+00> : vector<2x32xf32>
    %31 = tpu.matmul %28, %30, %cst_17 {dimension_numbers = #tpu.dot_dimension_numbers<[1], [0], [0], [1], [0, 0, 1, 1], [], []>} : vector<2x32xf32>, vector<32x32xf32>, vector<2x32xf32> -> vector<2x32xf32>
    %c0_18 = arith.constant 0 : index
    %c0_19 = arith.constant 0 : index
    %c0_20 = arith.constant 0 : index
    %32 = vector.load %arg7[%c0_18, %c0_19, %c0_20] : memref<2x1x32xf32, #tpu.memory_space<vmem>>, vector<1x1x32xf32>
    %33 = vector.shape_cast %32 : vector<1x1x32xf32> to vector<1x32xf32>
    %34 = vector.broadcast %33 : vector<1x32xf32> to vector<2x32xf32>
    %35 = arith.addf %31, %34 : vector<2x32xf32>
    %36 = math.tanh %35 : vector<2x32xf32>
    %c1_21 = arith.constant 1 : index
    %c0_22 = arith.constant 0 : index
    %c0_23 = arith.constant 0 : index
    %37 = vector.load %arg6[%c1_21, %c0_22, %c0_23] : memref<2x32x32xf32, #tpu.memory_space<vmem>>, vector<1x32x32xf32>
    %38 = vector.shape_cast %37 : vector<1x32x32xf32> to vector<32x32xf32>
    %cst_24 = arith.constant dense<0.000000e+00> : vector<2x32xf32>
    %39 = tpu.matmul %36, %38, %cst_24 {dimension_numbers = #tpu.dot_dimension_numbers<[1], [0], [0], [1], [0, 0, 1, 1], [], []>} : vector<2x32xf32>, vector<32x32xf32>, vector<2x32xf32> -> vector<2x32xf32>
    %c1_25 = arith.constant 1 : index
    %c0_26 = arith.constant 0 : index
    %c0_27 = arith.constant 0 : index
    %40 = vector.load %arg7[%c1_25, %c0_26, %c0_27] : memref<2x1x32xf32, #tpu.memory_space<vmem>>, vector<1x1x32xf32>
    %41 = vector.shape_cast %40 : vector<1x1x32xf32> to vector<1x32xf32>
    %42 = vector.broadcast %41 : vector<1x32xf32> to vector<2x32xf32>
    %43 = arith.addf %39, %42 : vector<2x32xf32>
    %44 = math.tanh %43 : vector<2x32xf32>
    %c0_28 = arith.constant 0 : index
    %c0_29 = arith.constant 0 : index
    %45 = vector.load %arg8[%c0_28, %c0_29] : memref<32x2xf32, #tpu.memory_space<vmem>>, vector<32x2xf32>
    %cst_30 = arith.constant dense<0.000000e+00> : vector<2x2xf32>
    %46 = tpu.matmul %44, %45, %cst_30 {dimension_numbers = #tpu.dot_dimension_numbers<[1], [0], [0], [1], [0, 0, 1, 1], [], []>} : vector<2x32xf32>, vector<32x2xf32>, vector<2x2xf32> -> vector<2x2xf32>
    %c0_31 = arith.constant 0 : index
    %c0_32 = arith.constant 0 : index
    %47 = vector.load %arg9[%c0_31, %c0_32] : memref<1x2xf32, #tpu.memory_space<vmem>>, vector<1x2xf32>
    %48 = vector.broadcast %47 : vector<1x2xf32> to vector<2x2xf32>
    %49 = arith.addf %46, %48 : vector<2x2xf32>
    %cst_33 = arith.constant 0.000000e+00 : f32
    %50 = vector.broadcast %cst_33 : f32 to vector<2x2xf32>
    %51 = arith.maximumf %49, %50 : vector<2x2xf32>
    %c0_34 = arith.constant 0 : index
    %c0_35 = arith.constant 0 : index
    %52 = vector.load %arg10[%c0_34, %c0_35] : memref<2x2xf32, #tpu.memory_space<vmem>>, vector<2x2xf32>
    tpu.vector_store %arg10[%c0_34, %c0_35], %51 {strides = array<i32>} : memref<2x2xf32, #tpu.memory_space<vmem>>, vector<2x2xf32>,
    return
  }
  func.func @transform_0(%arg0: i32) -> (i32, i32) {
    %c0_i32 = arith.constant 0 : i32
    %c0_i32_0 = arith.constant 0 : i32
    return %arg0, %c0_i32 : i32, i32
  }
  func.func @transform_1(%arg0: i32) -> (i32, i32) {
    %c0_i32 = arith.constant 0 : i32
    %c0_i32_0 = arith.constant 0 : i32
    %c0_i32_1 = arith.constant 0 : i32
    return %c0_i32, %c0_i32_0 : i32, i32
  }
  func.func @transform_2(%arg0: i32) -> (i32, i32) {
    %c0_i32 = arith.constant 0 : i32
    %c0_i32_0 = arith.constant 0 : i32
    %c0_i32_1 = arith.constant 0 : i32
    return %c0_i32, %c0_i32_0 : i32, i32
  }
  func.func @transform_3(%arg0: i32) -> (i32, i32) {
    %c0_i32 = arith.constant 0 : i32
    %c0_i32_0 = arith.constant 0 : i32
    %c0_i32_1 = arith.constant 0 : i32
    return %c0_i32, %c0_i32_0 : i32, i32
  }
  func.func @transform_4(%arg0: i32) -> (i32, i32) {
    %c0_i32 = arith.constant 0 : i32
    %c0_i32_0 = arith.constant 0 : i32
    %c0_i32_1 = arith.constant 0 : i32
    return %c0_i32, %c0_i32_0 : i32, i32
  }
  func.func @transform_5(%arg0: i32) -> (i32, i32, i32) {
    %c0_i32 = arith.constant 0 : i32
    %c0_i32_0 = arith.constant 0 : i32
    %c0_i32_1 = arith.constant 0 : i32
    %c0_i32_2 = arith.constant 0 : i32
    return %c0_i32, %c0_i32_0, %c0_i32_1 : i32, i32, i32
  }
  func.func @transform_6(%arg0: i32) -> (i32, i32, i32) {
    %c0_i32 = arith.constant 0 : i32
    %c0_i32_0 = arith.constant 0 : i32
    %c0_i32_1 = arith.constant 0 : i32
    %c0_i32_2 = arith.constant 0 : i32
    return %c0_i32, %c0_i32_0, %c0_i32_1 : i32, i32, i32
  }
  func.func @transform_7(%arg0: i32) -> (i32, i32) {
    %c0_i32 = arith.constant 0 : i32
    %c0_i32_0 = arith.constant 0 : i32
    %c0_i32_1 = arith.constant 0 : i32
    return %c0_i32, %c0_i32_0 : i32, i32
  }
  func.func @transform_8(%arg0: i32) -> (i32, i32) {
    %c0_i32 = arith.constant 0 : i32
    %c0_i32_0 = arith.constant 0 : i32
    %c0_i32_1 = arith.constant 0 : i32
    return %c0_i32, %c0_i32_0 : i32, i32
  }
  func.func @transform_9(%arg0: i32) -> (i32, i32) {
    %c0_i32 = arith.constant 0 : i32
    %c0_i32_0 = arith.constant 0 : i32
    return %arg0, %c0_i32 : i32, i32
  }
}

</mosaic_0001>

<bundles_post_ra>
// kernel: forward.1
= control target key start
LH: loop header
LB: loop body
LE: loop exit
PB: predicated region body
PF: predicated region fallthrough
CT: control target
= control target key end

     0   :  { %14 = vsyncpa [#allocation3], 0  ;;  %s627_s0 = inlined_call_operand.vmem [shape: f32[2,1], index: 0, kind: input, shape index: {}]   ;;  %s628_s1 = inlined_call_operand.vmem [shape: f32[2,32], index: 1, kind: input, shape index: {}]   ;;  %s629_s2 = inlined_call_operand.vmem [shape: f32[2,32], index: 2, kind: input, shape index: {}]   ;;  %s630_s3 = inlined_call_operand.vmem [shape: f32[2,32], index: 3, kind: input, shape index: {}]   ;;  %s631_s4 = inlined_call_operand.vmem [shape: f32[1,32], index: 4, kind: input, shape index: {}]   ;;  %s632_s5 = inlined_call_operand.hbm [shape: f32[2,32,32], index: 5, kind: input, shape index: {}]   ;;  %s633_s6 = inlined_call_operand.vmem [shape: f32[2,1,32], index: 6, kind: input, shape index: {}]   ;;  %s634_s7 = inlined_call_operand.vmem [shape: f32[32,2], index: 7, kind: input, shape index: {}]   ;;  %s635_s8 = inlined_call_operand.vmem [shape: f32[1,2], index: 8, kind: input, shape index: {}]   ;;  %s636_s9 = inlined_call_operand.hbm [shape: f32[2,2], index: 9, kind: output, shape index: {}]  }
   0x1   :  { %15 = vsyncpa [#allocation4], 0  ;;  %s498_s30 = smov [#allocation2]  }
   0x2   :  { %s31_s10 = sshll.u32 %s498_s30, 4  ;;  %s32_s10 = int_to_ptr.vmem [resolvable:$true] %s31_s10 }
   0x3   :  { %s462_s11 = scalar_lea.vmem %s32_s10, 1024  ;;  %p467_p1 = scmp.lt.s32.totalorder %s32_s10, %s32_s10 }
   0x4   :  { %p463_p0 = scmp.ne.s32.totalorder %s32_s10, %s462_s11  ;;  %p468_p2 = scmp.lt.s32.totalorder %s462_s11, %s462_s11 }
   0x6   :  { %p469_p3 = por %p468_p2, %p467_p1 }
   0x8   :  { %p470_p4 = pnand %p469_p3, %p463_p0 }
   0xa   :  { %473 = shalt.err (!%p470_p4)
}
   0xb   :  { %s499_s12 = smov 128   ;;  %s500_s13 = smov 8  }
   0xc   :  { %37 = dma.hbm_to_vmem [thread:$0]  %s632_s5, 1024, %s32_s10, [#allocation3], %s499_s12, %s499_s12, %s500_s13  }
   0xd   :  { %494 = dma.done.wait [#allocation3], 1024  }
   0xe   :  { %495 = vsyncadd [#allocation3], 4294966272  ;;  %v501_v0 = vmov 0   ;;  %v47_v1 = vld [vmem:[%s627_s0] sm:$0x3]  ;;  %v104_v2 = vld [vmem:[#allocation2 + $0x18] sm:$0xff] }
   0xf   :  { %445 = vset.pattern.permute.xlu0 %v501_v0  ;;  %v502_v3 = vmov 0.0   ;;  %v103_v4 = vld [vmem:[#allocation2 + $0x10] sm:$0xff]  ;;  %vm503_vm0 = vmmov 0   ;;  %v102_v5 = vld [vmem:[#allocation2 + $0x8] sm:$0xff]  ;;  %v101_v6 = vld [vmem:[#allocation2] sm:$0xff]  ;;  %vm112_vm1 = vcmask 261120  }
  0x10   :  { %50 = vperm.xlu0 %445, %v47_v1   ;;  %405 = vmatprep.subr.mxu0 %v502_v3  ;;  %v376_v7 = vld [vmem:[%s628_s1] ss:$0 sm:$0xff]  ;;  %v378_v8 = vld [vmem:[%s628_s1 + $0x1] ss:$0 sm:$0xff]  ;;  %v191_v26 = vld [vmem:[#allocation2 + $0x38] sm:$0xff]  ;;  %vm359_vm2 = vcmask 9216  }
  0x11   :  { %413 = vmatprep.mubr.msk.f32.mxu0 %vm503_vm0, %v502_v3  ;;  %406 = vmatpush3.msra.mxu0 %v104_v2  ;;  %v377_v9 = vld [vmem:[%s629_s2] ss:$0 sm:$0xff]  ;;  %v379_v10 = vld [vmem:[%s629_s2 + $0x1] ss:$0 sm:$0xff]  ;;  %v190_v27 = vld [vmem:[#allocation2 + $0x30] sm:$0xff] }
  0x12   :  { %416 = vmatprep.subr.mxu1 %v502_v3  ;;  %407 = vmatprep.subr.mxu0 %v502_v3  ;;  %v380_v16 = vld [vmem:[%s630_s3] ss:$0 sm:$0xff]  ;;  %v381_v17 = vld [vmem:[%s630_s3 + $0x1] ss:$0 sm:$0xff]  ;;  %v189_v28 = vld [vmem:[#allocation2 + $0x28] sm:$0xff] }
  0x13   :  { %424 = vmatprep.mubr.msk.f32.mxu1 %vm503_vm0, %v502_v3  ;;  %408 = vmatpush3.msra.mxu0 %v103_v4  ;;  %v382_v22 = vld [vmem:[%s631_s4] ss:$0 sm:$0xff]  ;;  %v277_v35 = vld [vmem:[%s634_s7 + $0x18] sm:$0xff]  ;;  %v276_v36 = vld [vmem:[%s634_s7 + $0x10] sm:$0xff] }
  0x14   :  { %409 = vmatprep.subr.mxu0 %v502_v3  ;;  %417 = vmatpush3.msra.mxu1 %v191_v26  ;;  %v188_v29 = vld [vmem:[#allocation2 + $0x20] sm:$0xff]  ;;  %v275_v37 = vld [vmem:[%s634_s7 + $0x8] sm:$0xff] }
  0x15   :  { %410 = vmatpush3.msra.mxu0 %v102_v5  ;;  %418 = vmatprep.subr.mxu1 %v502_v3  ;;  %v383_v30 = vld [vmem:[%s633_s6] ss:$0 sm:$0xff]  ;;  %v386_v39 = vld [vmem:[%s633_s6 + $0x1] ss:$0 sm:$0xff] }
  0x16   :  { %411 = vmatprep.subr.mxu0 %v502_v3  ;;  %419 = vmatpush3.msra.mxu1 %v190_v27  ;;  %v274_v38 = vld [vmem:[%s634_s7] sm:$0xff]  ;;  %s504_s7 = smov [#allocation5]  }
  0x17   :  { %412 = vmatpush3.msra.mxu0 %v101_v6  ;;  %420 = vmatprep.subr.mxu1 %v502_v3  ;;  %v388_v44 = vld [vmem:[%s635_s8] ss:$0 sm:$0xff]  ;;  %s367_s5 = sshll.u32 %s504_s7, 4  ;;  %s368_s5 = int_to_ptr.vmem [resolvable:$true] %s367_s5 }
  0x18   :  { %427 = vmatprep.subr.mxu0 %v502_v3  ;;  %421 = vmatpush3.msra.mxu1 %v189_v28  ;;  %s474_s6 = scalar_lea.vmem %s368_s5, 32  ;;  %p479_p6 = scmp.lt.s32.totalorder %s368_s5, %s368_s5 }
  0x19   :  { %422 = vmatprep.subr.mxu1 %v502_v3  ;;  %p475_p5 = scmp.ne.s32.totalorder %s368_s5, %s474_s6  ;;  %p480_p7 = scmp.lt.s32.totalorder %s474_s6, %s474_s6 }
  0x1a   :  { %423 = vmatpush3.msra.mxu1 %v188_v29 }
  0x1b   :  { %p481_p8 = por %p480_p7, %p479_p6 }
  0x1d   :  { %p482_p9 = pnand %p481_p8, %p475_p5 }
  0x8b   :  { %v51_v11 = vpop.permute.xlu0 %50 }
  0x8c   :  { %v58_v12 = vmul.f32 %v376_v7, %v51_v11  ;;  %v71_v13 = vmul.f32 %v378_v8, %v51_v11 }
  0x8e   :  { %v64_v14 = vadd.f32 %v377_v9, %v58_v12  ;;  %v77_v15 = vadd.f32 %v379_v10, %v71_v13 }
  0x90   :  { %446 = vtanh.f32 %v64_v14 }
  0x91   :  { %448 = vtanh.f32 %v77_v15 }
  0x9d   :  { %v447_v18 = vpop.eup %446 }
  0x9e   :  { %v449_v19 = vpop.eup %448  ;;  %v84_v20 = vmul.f32 %v447_v18, %v380_v16 }
  0x9f   :  { %v90_v21 = vmul.f32 %v449_v19, %v381_v17 }
  0xa1   :  { %v91_v23 = vadd.f32 %v90_v21, %v84_v20 }
  0xa3   :  { %v99_v24 = vadd.f32 %v382_v22, %v91_v23 }
  0xa5   :  { %v100_v25 = vmax.f32 %v99_v24, 0.0 }
  0xa7   :  { %414 = vmatmul.mubr.msk.f32.vlgmr.msra.gmra.mxu0 %vm112_vm1, %v100_v25 }
  0xa8   :  { %435 = vmatprep.mubr.msk.f32.mxu0 %vm503_vm0, %v502_v3  ;;  %428 = vmatpush3.msra.mxu0 %v277_v35 }
  0xa9   :  { %429 = vmatprep.subr.mxu0 %v502_v3 }
  0xaa   :  { %430 = vmatpush3.msra.mxu0 %v276_v36 }
  0xab   :  { %431 = vmatprep.subr.mxu0 %v502_v3 }
  0xac   :  { %432 = vmatpush3.msra.mxu0 %v275_v37 }
  0xad   :  { %433 = vmatprep.subr.mxu0 %v502_v3 }
  0xae   :  { %434 = vmatpush3.msra.mxu0 %v274_v38 }
 0x167   :  { %v182_v31 = vpop.f32.mrf.mxu0 }
 0x168   :  { %v183_v32 = vadd.f32 %v383_v30, %v182_v31 }
 0x169   :  { %v415_v33 = vpop.f32.mrf.mxu0 }
 0x16a   :  { %450 = vtanh.f32 %v183_v32 }
 0x177   :  { %v451_v34 = vpop.eup %450 }
 0x178   :  { %425 = vmatmul.mubr.msk.f32.vlgmr.msra.gmra.mxu1 %vm112_vm1, %v451_v34 }
 0x238   :  { %v269_v40 = vpop.f32.mrf.mxu1 }
 0x239   :  { %v270_v41 = vadd.f32 %v386_v39, %v269_v40 }
 0x23a   :  { %v426_v42 = vpop.f32.mrf.mxu1 }
 0x23b   :  { %452 = vtanh.f32 %v270_v41 }
 0x248   :  { %v453_v43 = vpop.eup %452 }
 0x249   :  { %436 = vmatmul.mubr.msk.f32.vlgmr.msra.gmra.mxu0 %vm112_vm1, %v453_v43 }
 0x309   :  { %v354_v45 = vpop.f32.mrf.mxu0 }
 0x30a   :  { %v355_v46 = vadd.f32 %v388_v44, %v354_v45 }
 0x30b   :  { %v437_v47 = vpop.f32.mrf.mxu0 }
 0x30c   :  { %v358_v48 = vmax.f32 %v355_v46, 0.0 }
 0x30e   :  { %360 = vst.msk [vmem:[#allocation5] sm:$0x3] %vm359_vm2, %v358_v48 }
 0x30f   :  { %485 = shalt.err (!%p482_p9)
}
 0x310   :  { %370 = dma.vmem_to_hbm [thread:$0]  %s368_s5, 32, %s636_s9, [#allocation4]  }
 0x311   :  { %496 = dma.done.wait [#allocation4], 32  }
 0x312   :  { %497 = vsyncadd [#allocation4], 4294967264 }
 0x313   :  { %374 = vsyncpa [#allocation3], 1 }
 0x314   :  { %375 = vsyncpa [#allocation4], 1 }

</bundles_post_ra>
